<compile_context>
chip_gen: v7x
topology: tpu7x:2x2x1
jax: 0.10.0
libtpu: 0.0.40
codegen_flags: <defaults>
</compile_context>

<pallas_src>
import jax
import jax.numpy as jnp
from jax import lax
from jax.experimental import pallas as pl
from jax.experimental.pallas import tpu as pltpu


def _weight_norm_linear_kernel(g_ref, x_ref, vt_ref, b_ref, o_ref):
    # vt_ref is v.T, shape (in_pad, out_pad), f32.  Zero padding contributes 0
    # to both the norm and the matmul, so results are unchanged.
    vt = vt_ref[...]

    # Frobenius norm of v in f32; g/||v|| via rsqrt (EUP slot).
    sq = jnp.sum(vt * vt)
    scale = g_ref[0, 0] * lax.rsqrt(sq)

    # MXU matmul: x (bf16) @ v.T (cast to bf16), accumulate in f32.
    # No transpose needed — the weight already arrives as [in, out].
    y = jnp.dot(x_ref[...], vt.astype(jnp.bfloat16),
                preferred_element_type=jnp.float32)

    # Apply the weight-norm scale to the small output instead of the weight,
    # then add the bias (broadcast over batch).
    o_ref[...] = y * scale + b_ref[...]


def weight_norm_linear(x, v, g, b):
    """y = x @ (v * g / ||v||_F).T + b  -- norm, rescale, matmul, bias in-kernel."""
    batch, in_f = x.shape
    out_f, _ = v.shape

    LANE, SUB = 128, 8
    in_p = ((in_f + LANE - 1) // LANE) * LANE
    out_p = ((out_f + LANE - 1) // LANE) * LANE
    batch_p = ((batch + SUB - 1) // SUB) * SUB

    # Lane-dense, zero-padded operands (padding is exact: contributes nothing).
    x_p = jnp.zeros((batch_p, in_p), jnp.bfloat16).at[:batch, :in_f].set(
        x.astype(jnp.bfloat16))
    vt_p = jnp.zeros((in_p, out_p), jnp.float32).at[:in_f, :out_f].set(
        v.T.astype(jnp.float32))
    b_p = jnp.zeros((1, out_p), jnp.float32).at[0, :out_f].set(
        b.astype(jnp.float32))
    g_s = jnp.asarray(g, jnp.float32).reshape(1, 1)

    out = pl.pallas_call(
        _weight_norm_linear_kernel,
        out_shape=jax.ShapeDtypeStruct((batch_p, out_p), jnp.float32),
        in_specs=[
            pl.BlockSpec(memory_space=pltpu.MemorySpace.SMEM),  # g (scalar)
            pl.BlockSpec((batch_p, in_p), lambda: (0, 0)),      # x (bf16)
            pl.BlockSpec((in_p, out_p), lambda: (0, 0)),        # v.T (f32)
            pl.BlockSpec((1, out_p), lambda: (0, 0)),           # bias (f32)
        ],
        out_specs=pl.BlockSpec((batch_p, out_p), lambda: (0, 0)),
    )(g_s, x_p, vt_p, b_p)

    return out[:batch, :out_f]


if __name__ == "__main__":
    key = jax.random.PRNGKey(0)
    k_x, k_w, k_b = jax.random.split(key, 3)

    batch, in_features, out_features = 8, 32, 16

    # Deterministic "checkpoint": raw Linear weight / bias.
    w = jax.random.normal(k_w, (out_features, in_features), jnp.float32) * 0.1
    b = jax.random.normal(k_b, (out_features,), jnp.float32) * 0.1
    x = jax.random.normal(k_x, (batch, in_features), jnp.float32)

    # WeightNorm._reset(): split weight into (g, v).
    g = jnp.sqrt(jnp.sum(w * w))   # torch.norm(w) — Frobenius scalar
    v = w / g

    # WeightNorm.forward(): re-normalize weight inside the kernel + linear.
    y = weight_norm_linear(x, v, g, b)
    y = jax.block_until_ready(y)

    # Pure-JAX f32 reference.
    w_ref = v * (g / jnp.sqrt(jnp.sum(v * v)))
    y_ref = x @ w_ref.T + b

    # bf16 MXU feed -> allow a small tolerance vs the f32 reference.
    if not jnp.allclose(y, y_ref, atol=2e-2, rtol=2e-2):
        raise AssertionError("Pallas WeightNorm kernel mismatch vs reference")

    print("KERNEL_OK")
</pallas_src>

<mosaic_0001>
module attributes {stable_mosaic.version = 11 : i64} {
  func.func @_weight_norm_linear_kernel(%arg0: memref<1x1xf32, #tpu.memory_space<smem>>, %arg1: memref<8x128xbf16, #tpu.memory_space<vmem>>, %arg2: memref<128x128xf32, #tpu.memory_space<vmem>>, %arg3: memref<1x128xf32, #tpu.memory_space<vmem>>, %arg4: memref<8x128xf32, #tpu.memory_space<vmem>>) attributes {dimension_semantics = [], scalar_prefetch = 0 : i64, scratch_operands = 0 : i64, tpu.core_type = #tpu.core_type<tc>} {
    %c0 = arith.constant 0 : index
    %c0_0 = arith.constant 0 : index
    %0 = vector.load %arg2[%c0, %c0_0] : memref<128x128xf32, #tpu.memory_space<vmem>>, vector<128x128xf32>
    %1 = arith.mulf %0, %0 : vector<128x128xf32>
    %2 = vector.shape_cast %1 : vector<128x128xf32> to vector<1x128x128xf32>
    %cst = arith.constant dense<0.000000e+00> : vector<1xf32>
    %3 = vector.multi_reduction <add>, %2, %cst [1, 2] : vector<1x128x128xf32> to vector<1xf32>
    %4 = vector.shape_cast %3 : vector<1xf32> to vector<1x1x1xf32>
    %5 = vector.extract %4[0, 0, 0] : f32 from vector<1x1x1xf32>
    %c0_1 = arith.constant 0 : index
    %c0_2 = arith.constant 0 : index
    %6 = memref.load %arg0[%c0_1, %c0_2] : memref<1x1xf32, #tpu.memory_space<smem>>
    %7 = math.rsqrt %5 : f32
    %8 = arith.mulf %6, %7 : f32
    %c0_3 = arith.constant 0 : index
    %c0_4 = arith.constant 0 : index
    %9 = vector.load %arg1[%c0_3, %c0_4] : memref<8x128xbf16, #tpu.memory_space<vmem>>, vector<8x128xbf16>
    %10 = arith.truncf %0 : vector<128x128xf32> to vector<128x128xbf16>
    %cst_5 = arith.constant dense<0.000000e+00> : vector<8x128xf32>
    %11 = tpu.matmul %9, %10, %cst_5 {dimension_numbers = #tpu.dot_dimension_numbers<[1], [0], [0], [1], [0, 0, 1, 1], [], []>} : vector<8x128xbf16>, vector<128x128xbf16>, vector<8x128xf32> -> vector<8x128xf32>
    %12 = vector.broadcast %8 : f32 to vector<8x128xf32>
    %13 = arith.mulf %11, %12 : vector<8x128xf32>
    %c0_6 = arith.constant 0 : index
    %c0_7 = arith.constant 0 : index
    %14 = vector.load %arg3[%c0_6, %c0_7] : memref<1x128xf32, #tpu.memory_space<vmem>>, vector<1x128xf32>
    %15 = vector.broadcast %14 : vector<1x128xf32> to vector<8x128xf32>
    %16 = arith.addf %13, %15 : vector<8x128xf32>
    %c0_8 = arith.constant 0 : index
    %c0_9 = arith.constant 0 : index
    %17 = vector.load %arg4[%c0_8, %c0_9] : memref<8x128xf32, #tpu.memory_space<vmem>>, vector<8x128xf32>
    tpu.vector_store %arg4[%c0_8, %c0_9], %16 {strides = array<i32>} : memref<8x128xf32, #tpu.memory_space<vmem>>, vector<8x128xf32>,
    return
  }
}

</mosaic_0001>

<bundles_post_ra>
// kernel: tpu_custom_call.1
= control target key start
LH: loop header
LB: loop body
LE: loop exit
PB: predicated region body
PF: predicated region fallthrough
CT: control target
= control target key end

     0   :  { %10 = vsyncpa [#allocation4], 0  ;;  %s388_s0 = inlined_call_operand.<no memory space> [shape: f32[1,1], index: 0, kind: input, shape index: {}]   ;;  %s389_s1 = inlined_call_operand.hbm [shape: bf16[8,128], index: 1, kind: input, shape index: {}]   ;;  %s390_s2 = inlined_call_operand.hbm [shape: f32[128,128], index: 2, kind: input, shape index: {}]   ;;  %s391_s3 = inlined_call_operand.vmem [shape: f32[1,128], index: 3, kind: input, shape index: {}]   ;;  %s392_s4 = inlined_call_operand.hbm [shape: f32[8,128], index: 4, kind: output, shape index: {}]  }
   0x1   :  { %11 = vsyncpa [#allocation7], 0 }
   0x2   :  { %12 = vsyncpa [#allocation5], 0  ;;  %s298_s15 = smov [#allocation3]   ;;  %s299_s17 = smov [#allocation6]  }
   0x3   :  { %s21_s16 = sshll.u32 %s298_s15, 4  ;;  %s30_s18 = sshll.u32 %s299_s17, 4  ;;  %s22_s16 = int_to_ptr.vmem [resolvable:$true] %s21_s16  ;;  %s330_s18 = int_to_ptr.vmem [resolvable:$true] %s30_s18 }
   0x4   :  { %s226_s21 = scalar_lea.hbm %s389_s1, 64 }
   0x5   :  { %p227_p0 = scmp.ne.s32.totalorder %s389_s1, %s226_s21  ;;  %p230_p1 = scmp.lt.u32.totalorder %s226_s21, %s389_s1 }
   0x7   :  { %p232_p2 = pnand %p230_p1, %p227_p0 }
   0x9   :  { %235 = shalt.err (!%p232_p2)
}
   0xa   :  { %s236_s26 = scalar_lea.vmem %s22_s16, 64  ;;  %p241_p4 = scmp.lt.s32.totalorder %s22_s16, %s22_s16 }
   0xb   :  { %p237_p3 = scmp.ne.s32.totalorder %s22_s16, %s236_s26  ;;  %p242_p5 = scmp.lt.s32.totalorder %s236_s26, %s236_s26 }
   0xd   :  { %p243_p6 = por %p242_p5, %p241_p4 }
   0xf   :  { %p244_p7 = pnand %p243_p6, %p237_p3 }
  0x11   :  { %247 = shalt.err (!%p244_p7)
}
  0x12   :  { %24 = dma.hbm_to_vmem [thread:$0]  %s389_s1, 64, %s22_s16, [#allocation4]  }
  0x13   :  { %s248_s5 = scalar_lea.hbm %s390_s2, 2048 }
  0x14   :  { %p249_p8 = scmp.ne.s32.totalorder %s390_s2, %s248_s5  ;;  %p252_p9 = scmp.lt.u32.totalorder %s248_s5, %s390_s2 }
  0x16   :  { %p254_p10 = pnand %p252_p9, %p249_p8 }
  0x18   :  { %257 = shalt.err (!%p254_p10)
}
  0x19   :  { %s258_s10 = scalar_lea.vmem %s330_s18, 2048  ;;  %p263_p12 = scmp.lt.s32.totalorder %s330_s18, %s330_s18 }
  0x1a   :  { %p259_p11 = scmp.ne.s32.totalorder %s330_s18, %s258_s10  ;;  %p264_p13 = scmp.lt.s32.totalorder %s258_s10, %s258_s10 }
  0x1c   :  { %p265_p0 = por %p264_p13, %p263_p12 }
  0x1e   :  { %p266_p1 = pnand %p265_p0, %p259_p11 }
  0x20   :  { %269 = shalt.err (!%p266_p1)
}
  0x21   :  { %s300_s1 = smov 128   ;;  %s301_s11 = smov 8  }
  0x22   :  { %36 = dma.hbm_to_vmem [thread:$0]  %s390_s2, 2048, %s330_s18, [#allocation7], %s300_s1, %s300_s1, %s301_s11  }
  0x23   :  { %292 = dma.done.wait [#allocation4], 64  }
  0x24   :  { %293 = vsyncadd [#allocation4], 4294967232 }
  0x25   :  { %294 = dma.done.wait [#allocation7], 2048  }
  0x26   :  { %295 = vsyncadd [#allocation7], 4294965248  ;;  %v302_v0 = vmov 0.0   ;;  %vm303_vm0 = vmmov 0   ;;  %v46_v1 = vld [vmem:[#allocation6] sm:$0xff]  ;;  %v47_v2 = vld [vmem:[#allocation6 + $0x8] sm:$0xff] }
  0x27   :  { %193 = vmatprep.subr.bf16.mxu0 %v302_v0  ;;  %209 = vmatprep.mubr.msk.bf16.mxu0 %vm303_vm0, %v302_v0  ;;  %v48_v3 = vld [vmem:[#allocation6 + $0x10] sm:$0xff]  ;;  %v49_v4 = vld [vmem:[#allocation6 + $0x18] sm:$0xff]  ;;  %v62_v5 = vmul.f32 %v46_v1, %v46_v1  ;;  %v63_v6 = vmul.f32 %v47_v2, %v47_v2  ;;  %v108_v8 = vpack.c.bf16 %v47_v2, %v46_v1  ;;  %v50_v9 = vld [vmem:[#allocation6 + $0x20] sm:$0xff]  ;;  %s304_s20 = smov [#allocation8]  }
  0x28   :  { %v64_v7 = vmul.f32 %v48_v3, %v48_v3  ;;  %v65_v10 = vmul.f32 %v49_v4, %v49_v4  ;;  %v109_v12 = vpack.c.bf16 %v49_v4, %v48_v3  ;;  %v51_v13 = vld [vmem:[#allocation6 + $0x28] sm:$0xff]  ;;  %v66_v14 = vmul.f32 %v50_v9, %v50_v9  ;;  %v52_v16 = vld [vmem:[#allocation6 + $0x30] sm:$0xff]  ;;  %v53_v20 = vld [vmem:[#allocation6 + $0x38] sm:$0xff]  ;;  %s173_s21 = sshll.u32 %s304_s20, 4  ;;  %s174_s21 = int_to_ptr.vmem [resolvable:$true] %s173_s21 }
  0x29   :  { %v78_v11 = vadd.f32 %v63_v6, %v62_v5  ;;  %194 = vmatpush3.bf16.msra.mxu0 %v108_v8  ;;  %v67_v17 = vmul.f32 %v51_v13, %v51_v13  ;;  %v110_v19 = vpack.c.bf16 %v51_v13, %v50_v9  ;;  %v68_v21 = vmul.f32 %v52_v16, %v52_v16  ;;  %v54_v23 = vld [vmem:[#allocation6 + $0x40] sm:$0xff]  ;;  %v55_v27 = vld [vmem:[#allocation6 + $0x48] sm:$0xff]  ;;  %v56_v30 = vld [vmem:[#allocation6 + $0x50] sm:$0xff]  ;;  %s270_s22 = scalar_lea.vmem %s174_s21, 128  ;;  %p275_p3 = scmp.lt.s32.totalorder %s174_s21, %s174_s21 }
  0x2a   :  { %195 = vmatprep.subr.bf16.mxu0 %v302_v0  ;;  %v69_v24 = vmul.f32 %v53_v20, %v53_v20  ;;  %v111_v26 = vpack.c.bf16 %v53_v20, %v52_v16  ;;  %v70_v28 = vmul.f32 %v54_v23, %v54_v23  ;;  %v71_v31 = vmul.f32 %v55_v27, %v55_v27  ;;  %v57_v34 = vld [vmem:[#allocation6 + $0x58] sm:$0xff]  ;;  %v58_v37 = vld [vmem:[#allocation6 + $0x60] sm:$0xff]  ;;  %v59_v41 = vld [vmem:[#allocation6 + $0x68] sm:$0xff]  ;;  %p271_p2 = scmp.ne.s32.totalorder %s174_s21, %s270_s22  ;;  %p276_p4 = scmp.lt.s32.totalorder %s270_s22, %s270_s22 }
  0x2b   :  { %v79_v15 = vadd.f32 %v78_v11, %v64_v7  ;;  %v112_v33 = vpack.c.bf16 %v55_v27, %v54_v23  ;;  %v72_v35 = vmul.f32 %v56_v30, %v56_v30  ;;  %v73_v38 = vmul.f32 %v57_v34, %v57_v34  ;;  %v60_v44 = vld [vmem:[#allocation6 + $0x70] sm:$0xff]  ;;  %v61_v48 = vld [vmem:[#allocation6 + $0x78] sm:$0xff] }
  0x2c   :  { %v113_v40 = vpack.c.bf16 %v57_v34, %v56_v30  ;;  %v74_v42 = vmul.f32 %v58_v37, %v58_v37  ;;  %v75_v45 = vmul.f32 %v59_v41, %v59_v41  ;;  %v114_v47 = vpack.c.bf16 %v59_v41, %v58_v37  ;;  %v107_v56 = vld [vmem:[#allocation3] sm:$0xf]  ;;  %p277_p5 = por %p276_p4, %p275_p3 }
  0x2d   :  { %v80_v18 = vadd.f32 %v79_v15, %v65_v10  ;;  %196 = vmatpush3.bf16.msra.mxu0 %v109_v12  ;;  %v76_v49 = vmul.f32 %v60_v44, %v60_v44  ;;  %v77_v51 = vmul.f32 %v61_v48, %v61_v48  ;;  %v115_v53 = vpack.c.bf16 %v61_v48, %v60_v44  ;;  %v183_v7 = vld [vmem:[%s391_s3] ss:$0 sm:$0xff] }
  0x2e   :  { %197 = vmatprep.subr.bf16.mxu0 %v302_v0  ;;  %p278_p6 = pnand %p277_p5, %p271_p2 }
  0x2f   :  { %v81_v22 = vadd.f32 %v80_v18, %v66_v14 }
  0x31   :  { %v82_v25 = vadd.f32 %v81_v22, %v67_v17  ;;  %198 = vmatpush3.bf16.msra.mxu0 %v110_v19 }
  0x32   :  { %199 = vmatprep.subr.bf16.mxu0 %v302_v0 }
  0x33   :  { %v83_v29 = vadd.f32 %v82_v25, %v68_v21 }
  0x35   :  { %v84_v32 = vadd.f32 %v83_v29, %v69_v24  ;;  %200 = vmatpush3.bf16.msra.mxu0 %v111_v26 }
  0x36   :  { %201 = vmatprep.subr.bf16.mxu0 %v302_v0 }
  0x37   :  { %v85_v36 = vadd.f32 %v84_v32, %v70_v28 }
  0x39   :  { %v86_v39 = vadd.f32 %v85_v36, %v71_v31  ;;  %202 = vmatpush3.bf16.msra.mxu0 %v112_v33 }
  0x3a   :  { %203 = vmatprep.subr.bf16.mxu0 %v302_v0 }
  0x3b   :  { %v87_v43 = vadd.f32 %v86_v39, %v72_v35 }
  0x3d   :  { %v88_v46 = vadd.f32 %v87_v43, %v73_v38  ;;  %204 = vmatpush3.bf16.msra.mxu0 %v113_v40 }
  0x3e   :  { %205 = vmatprep.subr.bf16.mxu0 %v302_v0 }
  0x3f   :  { %v89_v50 = vadd.f32 %v88_v46, %v74_v42 }
  0x41   :  { %v90_v52 = vadd.f32 %v89_v50, %v75_v45  ;;  %206 = vmatpush3.bf16.msra.mxu0 %v114_v47 }
  0x42   :  { %207 = vmatprep.subr.bf16.mxu0 %v302_v0 }
  0x43   :  { %v91_v54 = vadd.f32 %v90_v52, %v76_v49 }
  0x45   :  { %v92_v55 = vadd.f32 %v91_v54, %v77_v51  ;;  %208 = vmatpush3.bf16.msra.mxu0 %v115_v53 }
  0x47   :  { %93 = vadd.xlane.f32.xlu0 %v92_v55 }
  0x48   :  { %210 = vmatmul.mubr.bf16.vlgmr.msra.gmra.mrb[0].mxu0 %v107_v56 }
  0xd4   :  { %v94_v57 = vpop.xlane.xlu0 %93 }
  0xd5   :  { %v95_v58 = vrot.slane %v94_v57, 4 }
  0xd7   :  { %v96_v59 = vadd.f32 %v95_v58, %v94_v57 }
  0xd9   :  { %v97_v60 = vrot.slane %v96_v59, 2 }
  0xdb   :  { %v98_v61 = vadd.f32 %v97_v60, %v96_v59 }
  0xdd   :  { %v99_v62 = vrot.slane %v98_v61, 1 }
  0xdf   :  { %v100_v63 = vadd.f32 %v99_v62, %v98_v61 }
  0xe1   :  { %213 = vpush %v100_v63 }
 0x112   :  { %s214_s2 = spop %213 }
 0x113   :  { %v103_v1 = vstv %s214_s2 }
 0x114   :  { %224 = vrsqrt.f32 %v103_v1 }
 0x11b   :  { %v150_v2 = vpop.f32.mrb[0].mxu0 }
 0x11c   :  { %v211_v3 = vpop.f32.mrb[1].mxu0 }
 0x11d   :  { %v153_v0 = vpop.f32.mrb[2].mxu0 }
 0x11e   :  { %v225_v4 = vpop.eup %224  ;;  %v212_v5 = vpop.f32.mrb[3].mxu0 }
 0x11f   :  { %215 = vpush %v225_v4 }
 0x150   :  { %s216_s14 = spop %215 }
 0x151   :  { %s106_s17 = smul.f32 %s216_s14, %s388_s0 }
 0x153   :  { %v156_v6 = vstv %s106_s17 }
 0x154   :  { %v157_v8 = vmul.f32 %v156_v6, %v150_v2 }
 0x156   :  { %v165_v9 = vadd.f32 %v183_v7, %v157_v8 }
 0x158   :  { %166 = vst [vmem:[#allocation8] sm:$0xff] %v165_v9 }
 0x159   :  { %281 = shalt.err (!%p278_p6)
}
 0x15a   :  { %s282_s24 = scalar_lea.hbm %s392_s4, 128 }
 0x15b   :  { %p283_p7 = scmp.ne.s32.totalorder %s392_s4, %s282_s24  ;;  %p286_p8 = scmp.lt.u32.totalorder %s282_s24, %s392_s4 }
 0x15d   :  { %p288_p9 = pnand %p286_p8, %p283_p7 }
 0x15f   :  { %291 = shalt.err (!%p288_p9)
}
 0x160   :  { %176 = dma.vmem_to_hbm [thread:$0]  %s174_s21, 128, %s392_s4, [#allocation5]  }
 0x161   :  { %296 = dma.done.wait [#allocation5], 128  }
 0x162   :  { %297 = vsyncadd [#allocation5], 4294967168 }
 0x163   :  { %180 = vsyncpa [#allocation4], 1 }
 0x164   :  { %181 = vsyncpa [#allocation7], 1 }
 0x165   :  { %182 = vsyncpa [#allocation5], 1 }

</bundles_post_ra>
